<compile_context>
chip_gen: v6e
topology: v6e:2x2x1
jax: 0.10.0
libtpu: 0.0.40
codegen_flags: <defaults>
</compile_context>

<pallas_src>
import functools

import jax
import jax.numpy as jnp
from jax.experimental import pallas as pl
from jax.experimental.pallas import tpu as pltpu


def _round_up(v, m):
    return (v + m - 1) // m * m


def _vmem_limit_bytes():
    """Generation-aware VMEM limit: 75% of physical capacity (v7x=48MiB)."""
    try:
        cap = int(pltpu.get_tpu_info().vmem_capacity_bytes)
    except Exception:
        cap = 64 * 1024 * 1024      # conservative fallback (v7x-sized)
    return (cap * 3) // 4


def _single_buffered_spec(block_shape, index_map):
    """BlockSpec for grid-invariant operands: fetched once, 1 VMEM buffer."""
    try:
        return pl.BlockSpec(block_shape, index_map,
                            pipeline_mode=pl.Buffered(buffer_count=1))
    except Exception:               # older jax without pipeline_mode/Buffered
        return pl.BlockSpec(block_shape, index_map)


def _sep_conv_kernel(x_ref, wh_ref, bh_ref, ww_ref, scale_ref, shift_ref, o_ref,
                     *, TH, W, W8, Cp, Op, K, P):
    """One (batch, H-row-tile) step per grid point.

    x_ref:     (1, H_pad+2P, W8, Cp) bf16 input, zero-padded along H (halo +
               row-tile pad), W -> W8 (multiple of 8) and C -> Cp (mult of 128)
    wh_ref:    (K, Cp, Cp)  bf16 conv_h weights, tap-major (t, c_in, c_out)
    bh_ref:    (1, Cp)      f32  conv_h bias
    ww_ref:    (K, Cp, Op)  bf16 conv_w weights, tap-major (t, c_in, o)
    scale_ref: (1, Op)      f32  folded BN scale  (gamma / sqrt(var+eps))
    shift_ref: (1, Op)      f32  folded conv_w-bias + BN shift
    o_ref:     (1, TH*W8, Op) bf16 output rows [h*TH, h*TH+TH), flattened
    """
    row0 = pl.multiple_of(pl.program_id(1) * TH, TH)
    M = TH * W8
    slack = W8 - W          # zero pad columns available to absorb W-shifts

    # ---- stage 1: (k,1) conv along H, C -> C --------------------------------
    # Tap slices are major-axis offsets of the H-padded block (no relayout);
    # the (TH, W8, Cp) -> (M, Cp) reshape is free (W8 % 8 == 0, Cp % 128 == 0).
    acc1 = jnp.dot(x_ref[0, pl.ds(row0, TH), :, :].reshape(M, Cp), wh_ref[0],
                   preferred_element_type=jnp.float32)
    for t in range(1, K):
        acc1 = acc1 + jnp.dot(
            x_ref[0, pl.ds(row0 + t, TH), :, :].reshape(M, Cp), wh_ref[t],
            preferred_element_type=jnp.float32)

    wpos = jax.lax.broadcasted_iota(jnp.int32, (1, W8, 1), 1)   # tiny mask base
    y1 = (acc1 + bh_ref[...]).reshape(TH, W8, Cp)               # conv_h bias
    if slack > 0:
        y1 = y1 * (wpos < W).astype(y1.dtype)     # zero W-pad columns once
    y1b = y1.astype(jnp.bfloat16).reshape(M, Cp)  # single bf16 cast, pre taps

    # ---- stage 2: (1,k) conv along W, C -> O --------------------------------
    # Per tap: un-shifted MXU dot, then shift the f32 tap output along W with
    # pltpu.roll (XLU, static shift).  Because y1's pad columns are zero, the
    # roll wraparound only needs masking when |shift| exceeds the pad slack.
    acc2 = None
    for t in range(K):
        s = P - t                               # out[w] += tap_t[w - s]
        contrib = jnp.dot(y1b, ww_ref[t],
                          preferred_element_type=jnp.float32).reshape(TH, W8, Op)
        if s % W8 != 0:
            contrib = pltpu.roll(contrib, shift=s % W8, axis=1)
        if abs(s) > slack:                      # wraparound hits real columns
            keep = ((wpos >= s) & (wpos < W + s)).astype(contrib.dtype)
            contrib = contrib * keep
        acc2 = contrib if acc2 is None else acc2 + contrib

    # ---- folded conv_w bias + BatchNorm (eval) + ReLU, lane-dense store -----
    y = acc2.reshape(M, Op) * scale_ref[...] + shift_ref[...]
    o_ref[0] = jnp.maximum(y, 0.0).astype(o_ref.dtype)


def separable_conv2d(x_nchw, wh, bh, ww, bw, gamma, beta, run_mean, run_var,
                     *, kernel_size, padding, eps=1e-5, row_tile=None,
                     out_dtype=jnp.bfloat16, return_padded_nhwc=False):
    N, C, H, W = x_nchw.shape
    K, P = kernel_size, padding
    O = ww.shape[-1]
    assert wh.shape == (K, C, C) and ww.shape == (K, C, O)
    assert 2 * P == K - 1, "requires 'same' padding with stride=1"

    Cp = _round_up(C, 128)          # lane-dense channel dims
    Op = _round_up(O, 128)
    W8 = _round_up(W, 8)            # sublane-aligned width (free reshapes)
    if row_tile is None:
        row_tile = 8 if H % 8 == 0 else H   # zero-waste default
    TH = row_tile
    H_pad = _round_up(H, TH)        # extra rows computed then sliced off
    Hp = H_pad + 2 * P
    grid_h = H_pad // TH

    # ---- glue: layout + parameter folding (fuses into one pass under jit) ---
    x_pad = jnp.pad(jnp.transpose(x_nchw, (0, 2, 3, 1)),
                    ((0, 0), (P, P + H_pad - H), (0, W8 - W), (0, Cp - C)))
    x_pad = x_pad.astype(jnp.bfloat16)
    wh_p = jnp.pad(wh, ((0, 0), (0, Cp - C), (0, Cp - C))).astype(jnp.bfloat16)
    ww_p = jnp.pad(ww, ((0, 0), (0, Cp - C), (0, Op - O))).astype(jnp.bfloat16)
    bh_p = jnp.pad(bh, (0, Cp - C)).reshape(1, Cp).astype(jnp.float32)
    scale = gamma / jnp.sqrt(run_var + eps)                 # (O,)
    shift = beta + (bw - run_mean) * scale                  # (O,)
    scale_p = jnp.pad(scale, (0, Op - O)).reshape(1, Op).astype(jnp.float32)
    shift_p = jnp.pad(shift, (0, Op - O)).reshape(1, Op).astype(jnp.float32)

    kern = functools.partial(_sep_conv_kernel,
                             TH=TH, W=W, W8=W8, Cp=Cp, Op=Op, K=K, P=P)

    flops = 2 * N * H_pad * W8 * K * Cp * (Cp + Op)
    bytes_accessed = (x_pad.size * 2 + wh_p.size * 2 + ww_p.size * 2
                      + N * H_pad * W8 * Op * jnp.dtype(out_dtype).itemsize)

    out_flat = pl.pallas_call(
        kern,
        out_shape=jax.ShapeDtypeStruct((N, H_pad * W8, Op), out_dtype),
        grid_spec=pltpu.PrefetchScalarGridSpec(
            num_scalar_prefetch=0,
            grid=(N, grid_h),
            in_specs=[
                pl.BlockSpec((1, Hp, W8, Cp), lambda n, h: (n, 0, 0, 0)),
                _single_buffered_spec((K, Cp, Cp), lambda n, h: (0, 0, 0)),
                _single_buffered_spec((1, Cp), lambda n, h: (0, 0)),
                _single_buffered_spec((K, Cp, Op), lambda n, h: (0, 0, 0)),
                _single_buffered_spec((1, Op), lambda n, h: (0, 0)),
                _single_buffered_spec((1, Op), lambda n, h: (0, 0)),
            ],
            out_specs=pl.BlockSpec((1, TH * W8, Op), lambda n, h: (n, h, 0)),
        ),
        compiler_params=pltpu.CompilerParams(
            dimension_semantics=("parallel", "parallel"),
            vmem_limit_bytes=_vmem_limit_bytes()),
        cost_estimate=pl.CostEstimate(
            flops=flops, transcendentals=0, bytes_accessed=bytes_accessed),
    )(x_pad, wh_p, bh_p, ww_p, scale_p, shift_p)

    if return_padded_nhwc:
        # bf16 NHWC with pad rows/cols/channels containing garbage: consumers
        # fusing on top of this must mask [H:, :], [:, W:], [..., O:].
        return out_flat.reshape(N, H_pad, W8, Op)

    out = out_flat.reshape(N, H_pad, W8, Op)[:, :H, :W, :O]   # drop padding
    return jnp.transpose(out, (0, 3, 1, 2)).astype(x_nchw.dtype)   # NCHW


def _reference(x, wh, bh, ww, bw, gamma, beta, run_mean, run_var,
               *, padding, eps=1e-5):
    """Pure-JAX f32 reference matching the PyTorch module (eval-mode BN)."""
    P = padding
    w_h = jnp.transpose(wh, (2, 1, 0))[:, :, :, None]   # (C_out, C_in, K, 1)
    w_w = jnp.transpose(ww, (2, 1, 0))[:, :, None, :]   # (O, C, 1, K)
    dn = ('NCHW', 'OIHW', 'NCHW')
    y = jax.lax.conv_general_dilated(x, w_h, (1, 1), [(P, P), (0, 0)],
                                     dimension_numbers=dn)
    y = y + bh[None, :, None, None]
    y = jax.lax.conv_general_dilated(y, w_w, (1, 1), [(0, 0), (P, P)],
                                     dimension_numbers=dn)
    y = y + bw[None, :, None, None]
    y = ((y - run_mean[None, :, None, None])
         / jnp.sqrt(run_var[None, :, None, None] + eps)
         * gamma[None, :, None, None] + beta[None, :, None, None])
    return jnp.maximum(y, 0.0)


if __name__ == "__main__":
    def _make_inputs(key, N, C, H, W, O, K):
        ks = jax.random.split(key, 9)
        x = jax.random.normal(ks[0], (N, C, H, W), dtype=jnp.float32)
        # Tap-major weight layouts:
        #   wh[t, c_in, c_out] <-> conv_h.weight[c_out, c_in, t, 0]
        #   ww[t, c_in, o]     <-> conv_w.weight[o, c_in, 0, t]
        wh = jax.random.normal(ks[1], (K, C, C), dtype=jnp.float32) * 0.1
        bh = jax.random.normal(ks[2], (C,), dtype=jnp.float32) * 0.1
        ww = jax.random.normal(ks[3], (K, C, O), dtype=jnp.float32) * 0.1
        bw = jax.random.normal(ks[4], (O,), dtype=jnp.float32) * 0.1
        gamma = jax.random.uniform(ks[5], (O,), minval=0.5, maxval=1.5)
        beta = jax.random.normal(ks[6], (O,), dtype=jnp.float32) * 0.1
        run_mean = jax.random.normal(ks[7], (O,), dtype=jnp.float32) * 0.1
        run_var = jax.random.uniform(ks[8], (O,), minval=0.5, maxval=1.5)
        return (x, wh, bh, ww, bw, gamma, beta, run_mean, run_var)

    key = jax.random.PRNGKey(0)
    k1, k2 = jax.random.split(key)

    # Case 1: k=3, pad=1; H=16 -> default row tile 8, grid (2, 2); W == W8.
    N, C, H, W, O, K, P = 2, 4, 16, 16, 8, 3, 1
    args1 = _make_inputs(k1, N, C, H, W, O, K)
    fn1 = jax.jit(functools.partial(separable_conv2d, kernel_size=K, padding=P))
    out1 = jax.block_until_ready(fn1(*args1))
    ref1 = _reference(*args1, padding=P)
    assert out1.shape == (N, O, H, W), out1.shape
    err1 = float(jnp.max(jnp.abs(out1 - ref1)))
    assert jnp.allclose(out1, ref1, atol=3e-2, rtol=3e-2), err1

    # Case 2: k=5, pad=2; ragged W (W8 slack, no-mask path) and padded H-row
    # tiles (H=12, row_tile=8 -> H_pad=16, one partial/garbage tile sliced).
    N, C, H, W, O, K, P = 1, 8, 12, 10, 16, 5, 2
    args2 = _make_inputs(k2, N, C, H, W, O, K)
    fn2 = jax.jit(functools.partial(separable_conv2d, kernel_size=K, padding=P,
                                    row_tile=8))
    out2 = jax.block_until_ready(fn2(*args2))
    ref2 = _reference(*args2, padding=P)
    assert out2.shape == (N, O, H, W), out2.shape
    err2 = float(jnp.max(jnp.abs(out2 - ref2)))
    assert jnp.allclose(out2, ref2, atol=3e-2, rtol=3e-2), err2

    print("KERNEL_OK")
</pallas_src>

<mosaic_0001>
module attributes {stable_mosaic.version = 11 : i64} {
  func.func @_sep_conv_kernel(%arg0: i32, %arg1: i32, %arg2: memref<1x18x16x128xbf16, #tpu.memory_space<vmem>>, %arg3: memref<3x128x128xbf16, #tpu.memory_space<vmem>>, %arg4: memref<1x128xf32, #tpu.memory_space<vmem>>, %arg5: memref<3x128x128xbf16, #tpu.memory_space<vmem>>, %arg6: memref<1x128xf32, #tpu.memory_space<vmem>>, %arg7: memref<1x128xf32, #tpu.memory_space<vmem>>, %arg8: memref<1x128x128xbf16, #tpu.memory_space<vmem>>) attributes {dimension_semantics = [#tpu.dimension_semantics<parallel>, #tpu.dimension_semantics<parallel>], iteration_bounds = array<i64: 2, 2>, scalar_prefetch = 0 : i64, scratch_operands = 0 : i64, tpu.core_type = #tpu.core_type<tc>, window_params = [{transform_indices = @transform_0, window_bounds = array<i64: 1, 18, 16, 128>}, {pipeline_mode = #tpu.pipeline_mode<synchronous>, transform_indices = @transform_1, window_bounds = array<i64: 3, 128, 128>}, {pipeline_mode = #tpu.pipeline_mode<synchronous>, transform_indices = @transform_2, window_bounds = array<i64: 1, 128>}, {pipeline_mode = #tpu.pipeline_mode<synchronous>, transform_indices = @transform_3, window_bounds = array<i64: 3, 128, 128>}, {pipeline_mode = #tpu.pipeline_mode<synchronous>, transform_indices = @transform_4, window_bounds = array<i64: 1, 128>}, {pipeline_mode = #tpu.pipeline_mode<synchronous>, transform_indices = @transform_5, window_bounds = array<i64: 1, 128>}, {transform_indices = @transform_6, window_bounds = array<i64: 1, 128, 128>}]} {
    %c8_i32 = arith.constant 8 : i32
    %0 = arith.muli %arg1, %c8_i32 : i32
    %1 = tpu.assume_multiple %0, 8 : i32
    %c0 = arith.constant 0 : index
    %2 = arith.index_cast %1 : i32 to index
    %c0_0 = arith.constant 0 : index
    %c0_1 = arith.constant 0 : index
    %3 = vector.load %arg2[%c0, %2, %c0_0, %c0_1] : memref<1x18x16x128xbf16, #tpu.memory_space<vmem>>, vector<1x8x16x128xbf16>
    %4 = vector.shape_cast %3 : vector<1x8x16x128xbf16> to vector<8x16x128xbf16>
    %5 = vector.shape_cast %4 : vector<8x16x128xbf16> to vector<128x128xbf16>
    %c0_2 = arith.constant 0 : index
    %c0_3 = arith.constant 0 : index
    %c0_4 = arith.constant 0 : index
    %6 = vector.load %arg3[%c0_2, %c0_3, %c0_4] : memref<3x128x128xbf16, #tpu.memory_space<vmem>>, vector<1x128x128xbf16>
    %7 = vector.shape_cast %6 : vector<1x128x128xbf16> to vector<128x128xbf16>
    %cst = arith.constant dense<0.000000e+00> : vector<128x128xf32>
    %8 = tpu.matmul %5, %7, %cst {dimension_numbers = #tpu.dot_dimension_numbers<[1], [0], [0], [1], [0, 0, 1, 1], [], []>} : vector<128x128xbf16>, vector<128x128xbf16>, vector<128x128xf32> -> vector<128x128xf32>
    %c1_i32 = arith.constant 1 : i32
    %9 = arith.addi %1, %c1_i32 : i32
    %c0_5 = arith.constant 0 : index
    %10 = arith.index_cast %9 : i32 to index
    %c0_6 = arith.constant 0 : index
    %c0_7 = arith.constant 0 : index
    %11 = vector.load %arg2[%c0_5, %10, %c0_6, %c0_7] : memref<1x18x16x128xbf16, #tpu.memory_space<vmem>>, vector<1x8x16x128xbf16>
    %12 = vector.shape_cast %11 : vector<1x8x16x128xbf16> to vector<8x16x128xbf16>
    %13 = vector.shape_cast %12 : vector<8x16x128xbf16> to vector<128x128xbf16>
    %c1 = arith.constant 1 : index
    %c0_8 = arith.constant 0 : index
    %c0_9 = arith.constant 0 : index
    %14 = vector.load %arg3[%c1, %c0_8, %c0_9] : memref<3x128x128xbf16, #tpu.memory_space<vmem>>, vector<1x128x128xbf16>
    %15 = vector.shape_cast %14 : vector<1x128x128xbf16> to vector<128x128xbf16>
    %cst_10 = arith.constant dense<0.000000e+00> : vector<128x128xf32>
    %16 = tpu.matmul %13, %15, %cst_10 {dimension_numbers = #tpu.dot_dimension_numbers<[1], [0], [0], [1], [0, 0, 1, 1], [], []>} : vector<128x128xbf16>, vector<128x128xbf16>, vector<128x128xf32> -> vector<128x128xf32>
    %17 = arith.addf %8, %16 : vector<128x128xf32>
    %c2_i32 = arith.constant 2 : i32
    %18 = arith.addi %1, %c2_i32 : i32
    %c0_11 = arith.constant 0 : index
    %19 = arith.index_cast %18 : i32 to index
    %c0_12 = arith.constant 0 : index
    %c0_13 = arith.constant 0 : index
    %20 = vector.load %arg2[%c0_11, %19, %c0_12, %c0_13] : memref<1x18x16x128xbf16, #tpu.memory_space<vmem>>, vector<1x8x16x128xbf16>
    %21 = vector.shape_cast %20 : vector<1x8x16x128xbf16> to vector<8x16x128xbf16>
    %22 = vector.shape_cast %21 : vector<8x16x128xbf16> to vector<128x128xbf16>
    %c2 = arith.constant 2 : index
    %c0_14 = arith.constant 0 : index
    %c0_15 = arith.constant 0 : index
    %23 = vector.load %arg3[%c2, %c0_14, %c0_15] : memref<3x128x128xbf16, #tpu.memory_space<vmem>>, vector<1x128x128xbf16>
    %24 = vector.shape_cast %23 : vector<1x128x128xbf16> to vector<128x128xbf16>
    %cst_16 = arith.constant dense<0.000000e+00> : vector<128x128xf32>
    %25 = tpu.matmul %22, %24, %cst_16 {dimension_numbers = #tpu.dot_dimension_numbers<[1], [0], [0], [1], [0, 0, 1, 1], [], []>} : vector<128x128xbf16>, vector<128x128xbf16>, vector<128x128xf32> -> vector<128x128xf32>
    %26 = arith.addf %17, %25 : vector<128x128xf32>
    %27 = tpu.iota {dimensions = array<i32: 1>} : vector<1x16x1xi32>
    %c0_17 = arith.constant 0 : index
    %c0_18 = arith.constant 0 : index
    %28 = vector.load %arg4[%c0_17, %c0_18] : memref<1x128xf32, #tpu.memory_space<vmem>>, vector<1x128xf32>
    %29 = vector.broadcast %28 : vector<1x128xf32> to vector<128x128xf32>
    %30 = arith.addf %26, %29 : vector<128x128xf32>
    %31 = vector.shape_cast %30 : vector<128x128xf32> to vector<8x16x128xf32>
    %32 = arith.truncf %31 : vector<8x16x128xf32> to vector<8x16x128xbf16>
    %33 = vector.shape_cast %32 : vector<8x16x128xbf16> to vector<128x128xbf16>
    %c0_19 = arith.constant 0 : index
    %c0_20 = arith.constant 0 : index
    %c0_21 = arith.constant 0 : index
    %34 = vector.load %arg5[%c0_19, %c0_20, %c0_21] : memref<3x128x128xbf16, #tpu.memory_space<vmem>>, vector<1x128x128xbf16>
    %35 = vector.shape_cast %34 : vector<1x128x128xbf16> to vector<128x128xbf16>
    %cst_22 = arith.constant dense<0.000000e+00> : vector<128x128xf32>
    %36 = tpu.matmul %33, %35, %cst_22 {dimension_numbers = #tpu.dot_dimension_numbers<[1], [0], [0], [1], [0, 0, 1, 1], [], []>} : vector<128x128xbf16>, vector<128x128xbf16>, vector<128x128xf32> -> vector<128x128xf32>
    %37 = vector.shape_cast %36 : vector<128x128xf32> to vector<8x16x128xf32>
    %c1_i32_23 = arith.constant 1 : i32
    %38 = tpu.dynamic_rotate %37 by %c1_i32_23 dim 1 : vector<8x16x128xf32>, i32 -> vector<8x16x128xf32>
    %c1_i32_24 = arith.constant 1 : i32
    %39 = vector.broadcast %c1_i32_24 : i32 to vector<1x16x1xi32>
    %40 = arith.cmpi sge, %27, %39 : vector<1x16x1xi32>
    %c17_i32 = arith.constant 17 : i32
    %41 = vector.broadcast %c17_i32 : i32 to vector<1x16x1xi32>
    %42 = arith.cmpi slt, %27, %41 : vector<1x16x1xi32>
    %43 = arith.andi %40, %42 : vector<1x16x1xi1>
    %44 = arith.extui %43 : vector<1x16x1xi1> to vector<1x16x1xi32>
    %45 = arith.sitofp %44 : vector<1x16x1xi32> to vector<1x16x1xf32>
    %46 = vector.broadcast %45 : vector<1x16x1xf32> to vector<8x16x128xf32>
    %47 = arith.mulf %38, %46 : vector<8x16x128xf32>
    %c1_25 = arith.constant 1 : index
    %c0_26 = arith.constant 0 : index
    %c0_27 = arith.constant 0 : index
    %48 = vector.load %arg5[%c1_25, %c0_26, %c0_27] : memref<3x128x128xbf16, #tpu.memory_space<vmem>>, vector<1x128x128xbf16>
    %49 = vector.shape_cast %48 : vector<1x128x128xbf16> to vector<128x128xbf16>
    %cst_28 = arith.constant dense<0.000000e+00> : vector<128x128xf32>
    %50 = tpu.matmul %33, %49, %cst_28 {dimension_numbers = #tpu.dot_dimension_numbers<[1], [0], [0], [1], [0, 0, 1, 1], [], []>} : vector<128x128xbf16>, vector<128x128xbf16>, vector<128x128xf32> -> vector<128x128xf32>
    %51 = vector.shape_cast %50 : vector<128x128xf32> to vector<8x16x128xf32>
    %52 = arith.addf %47, %51 : vector<8x16x128xf32>
    %c2_29 = arith.constant 2 : index
    %c0_30 = arith.constant 0 : index
    %c0_31 = arith.constant 0 : index
    %53 = vector.load %arg5[%c2_29, %c0_30, %c0_31] : memref<3x128x128xbf16, #tpu.memory_space<vmem>>, vector<1x128x128xbf16>
    %54 = vector.shape_cast %53 : vector<1x128x128xbf16> to vector<128x128xbf16>
    %cst_32 = arith.constant dense<0.000000e+00> : vector<128x128xf32>
    %55 = tpu.matmul %33, %54, %cst_32 {dimension_numbers = #tpu.dot_dimension_numbers<[1], [0], [0], [1], [0, 0, 1, 1], [], []>} : vector<128x128xbf16>, vector<128x128xbf16>, vector<128x128xf32> -> vector<128x128xf32>
    %56 = vector.shape_cast %55 : vector<128x128xf32> to vector<8x16x128xf32>
    %c15_i32 = arith.constant 15 : i32
    %57 = tpu.dynamic_rotate %56 by %c15_i32 dim 1 : vector<8x16x128xf32>, i32 -> vector<8x16x128xf32>
    %c-1_i32 = arith.constant -1 : i32
    %58 = vector.broadcast %c-1_i32 : i32 to vector<1x16x1xi32>
    %59 = arith.cmpi sge, %27, %58 : vector<1x16x1xi32>
    %c15_i32_33 = arith.constant 15 : i32
    %60 = vector.broadcast %c15_i32_33 : i32 to vector<1x16x1xi32>
    %61 = arith.cmpi slt, %27, %60 : vector<1x16x1xi32>
    %62 = arith.andi %59, %61 : vector<1x16x1xi1>
    %63 = arith.extui %62 : vector<1x16x1xi1> to vector<1x16x1xi32>
    %64 = arith.sitofp %63 : vector<1x16x1xi32> to vector<1x16x1xf32>
    %65 = vector.broadcast %64 : vector<1x16x1xf32> to vector<8x16x128xf32>
    %66 = arith.mulf %57, %65 : vector<8x16x128xf32>
    %67 = arith.addf %52, %66 : vector<8x16x128xf32>
    %68 = vector.shape_cast %67 : vector<8x16x128xf32> to vector<128x128xf32>
    %c0_34 = arith.constant 0 : index
    %c0_35 = arith.constant 0 : index
    %69 = vector.load %arg6[%c0_34, %c0_35] : memref<1x128xf32, #tpu.memory_space<vmem>>, vector<1x128xf32>
    %70 = vector.broadcast %69 : vector<1x128xf32> to vector<128x128xf32>
    %71 = arith.mulf %68, %70 : vector<128x128xf32>
    %c0_36 = arith.constant 0 : index
    %c0_37 = arith.constant 0 : index
    %72 = vector.load %arg7[%c0_36, %c0_37] : memref<1x128xf32, #tpu.memory_space<vmem>>, vector<1x128xf32>
    %73 = vector.broadcast %72 : vector<1x128xf32> to vector<128x128xf32>
    %74 = arith.addf %71, %73 : vector<128x128xf32>
    %cst_38 = arith.constant 0.000000e+00 : f32
    %75 = vector.broadcast %cst_38 : f32 to vector<128x128xf32>
    %76 = arith.maximumf %74, %75 : vector<128x128xf32>
    %77 = arith.truncf %76 : vector<128x128xf32> to vector<128x128xbf16>
    %c0_39 = arith.constant 0 : index
    %c0_40 = arith.constant 0 : index
    %c0_41 = arith.constant 0 : index
    %78 = vector.load %arg8[%c0_39, %c0_40, %c0_41] : memref<1x128x128xbf16, #tpu.memory_space<vmem>>, vector<1x128x128xbf16>
    %79 = vector.shape_cast %78 : vector<1x128x128xbf16> to vector<128x128xbf16>
    %80 = vector.shape_cast %77 : vector<128x128xbf16> to vector<1x128x128xbf16>
    tpu.vector_store %arg8[%c0_39, %c0_40, %c0_41], %80 {strides = array<i32>} : memref<1x128x128xbf16, #tpu.memory_space<vmem>>, vector<1x128x128xbf16>,
    return
  }
  func.func @transform_0(%arg0: i32, %arg1: i32) -> (i32, i32, i32, i32) {
    %c0_i32 = arith.constant 0 : i32
    %c0_i32_0 = arith.constant 0 : i32
    %c0_i32_1 = arith.constant 0 : i32
    %c0_i32_2 = arith.constant 0 : i32
    return %arg0, %c0_i32, %c0_i32_0, %c0_i32_1 : i32, i32, i32, i32
  }
  func.func @transform_1(%arg0: i32, %arg1: i32) -> (i32, i32, i32) {
    %c0_i32 = arith.constant 0 : i32
    %c0_i32_0 = arith.constant 0 : i32
    %c0_i32_1 = arith.constant 0 : i32
    %c0_i32_2 = arith.constant 0 : i32
    return %c0_i32, %c0_i32_0, %c0_i32_1 : i32, i32, i32
  }
  func.func @transform_2(%arg0: i32, %arg1: i32) -> (i32, i32) {
    %c0_i32 = arith.constant 0 : i32
    %c0_i32_0 = arith.constant 0 : i32
    %c0_i32_1 = arith.constant 0 : i32
    return %c0_i32, %c0_i32_0 : i32, i32
  }
  func.func @transform_3(%arg0: i32, %arg1: i32) -> (i32, i32, i32) {
    %c0_i32 = arith.constant 0 : i32
    %c0_i32_0 = arith.constant 0 : i32
    %c0_i32_1 = arith.constant 0 : i32
    %c0_i32_2 = arith.constant 0 : i32
    return %c0_i32, %c0_i32_0, %c0_i32_1 : i32, i32, i32
  }
  func.func @transform_4(%arg0: i32, %arg1: i32) -> (i32, i32) {
    %c0_i32 = arith.constant 0 : i32
    %c0_i32_0 = arith.constant 0 : i32
    %c0_i32_1 = arith.constant 0 : i32
    return %c0_i32, %c0_i32_0 : i32, i32
  }
  func.func @transform_5(%arg0: i32, %arg1: i32) -> (i32, i32) {
    %c0_i32 = arith.constant 0 : i32
    %c0_i32_0 = arith.constant 0 : i32
    %c0_i32_1 = arith.constant 0 : i32
    return %c0_i32, %c0_i32_0 : i32, i32
  }
  func.func @transform_6(%arg0: i32, %arg1: i32) -> (i32, i32, i32) {
    %c0_i32 = arith.constant 0 : i32
    %c0_i32_0 = arith.constant 0 : i32
    return %arg0, %arg1, %c0_i32 : i32, i32, i32
  }
}

</mosaic_0001>

<bundles_post_ra>
// kernel: separable_conv2d.1
= control target key start
LH: loop header
LB: loop body
LE: loop exit
PB: predicated region body
PF: predicated region fallthrough
CT: control target
= control target key end

     0   :  { %s2638_s21 = smov 0   ;;  %s2640_s22 = smov 0   ;;  %s3151_s0 = inlined_call_operand.vmem [shape: bf16[2,18,16,128], index: 0, kind: input, shape index: {}]   ;;  %s3152_s1 = inlined_call_operand.vmem [shape: bf16[3,128,128], index: 1, kind: input, shape index: {}]   ;;  %s3153_s2 = inlined_call_operand.vmem [shape: f32[1,128], index: 2, kind: input, shape index: {}]   ;;  %s3154_s3 = inlined_call_operand.vmem [shape: bf16[3,128,128], index: 3, kind: input, shape index: {}]   ;;  %s3155_s4 = inlined_call_operand.vmem [shape: f32[1,128], index: 4, kind: input, shape index: {}]   ;;  %s3156_s5 = inlined_call_operand.vmem [shape: f32[1,128], index: 5, kind: input, shape index: {}]   ;;  %s3157_s6 = inlined_call_operand.vmem [shape: bf16[2,256,128], index: 6, kind: output, shape index: {}]  }
   0x1   :  { %s2642_s23 = smov 0   ;;  %s2644_s24 = smov 0  }
   0x2   :  { %s2646_s25 = smov 0  }
   0x3 LB: > { %s25_s26 = sadd.s32 1, %s2592_s23  ;;  %s28_s27 = sadd.s32 1, %s2596_s24  ;;  %s2600_s25 = sphi %s2646_s25, %s16_s25   ;;  %s2596_s24 = sphi %s2644_s24, %s3162_s24   ;;  %s2592_s23 = sphi %s2642_s23, %s3161_s23   ;;  %s2588_s22 = sphi %s2640_s22, %s3160_s22   ;;  %s2584_s21 = sphi %s2638_s21, %s3159_s21  }
   0x4   : > { %p26_p0 = scmp.ge.s32.totalorder %s25_s26, 2  ;;  %p1890_p1 = scmp.ge.s32.totalorder %s2600_s25, 1 }
   0x5   : > { %p226_p2 = scmp.lt.s32.totalorder %s2600_s25, 5 }
   0x6   : > { %s3164_s26 = smov (%p26_p0, %s25_s26), 0  ;;  %s3166_s27 = smov (!%p26_p0, %s28_s27), %s2596_s24 }
   0x7   : > { %p227_p3 = pnand %p1890_p1, %p226_p2  ;;  %p30_p4 = scmp.ge.s32.totalorder %s3166_s27, 2 }
   0x8   : > { %p260_p5 = scmp.lt.s32.totalorder (!%p227_p3), %s2588_s22, 1  ;;  %s2094_s7 = sshll.u32 (!%p227_p3), %s2584_s21, 6 }
   0x9   : > { %s3168_s27 = smov (%p30_p4, %s3166_s27), 0  ;;  %230 = sbr.rel (%p227_p3) target bundleno = 557 (0x22d), region = 44 }
   0xe   : > { %v2490_v0 = vld [vmem:[%s3152_s1 + $0x78] sm:$0xff]   ;;  %v2492_v2 = vld [vmem:[%s3152_s1 + $0x70] sm:$0xff]   ;;  %s3170_s22 = smov (!%p260_p5, %s2588_s22), 1  ;;  %v2494_v4 = vld [vmem:[%s3152_s1 + $0x68] sm:$0xff]  }
   0xf   : > { %v2491_v1 = vld [vmem:[%s3152_s1 + $0x38] sm:$0xff]   ;;  %2256 = vmatprep.subr.bf16.mxu0 %v2490_v0  ;;  %v2493_v3 = vld [vmem:[%s3152_s1 + $0x30] sm:$0xff]   ;;  %v2495_v5 = vld [vmem:[%s3152_s1 + $0x28] sm:$0xff]   ;;  %s2448_s16 = smul.u32 144, %s3170_s22 }
  0x10   : > { %2288 = vmatprep.subr.bf16.mxu1 %v2491_v1  ;;  %2257 = vmatpush3.bf16.msra.mxu0 %v2490_v0  ;;  %v2496_v6 = vld [vmem:[%s3152_s1 + $0x60] sm:$0xff]   ;;  %v2498_v8 = vld [vmem:[%s3152_s1 + $0x58] sm:$0xff]   ;;  %v2500_v10 = vld [vmem:[%s3152_s1 + $0x50] sm:$0xff]  }
  0x11   : > { %2289 = vmatpush3.bf16.msra.mxu1 %v2491_v1  ;;  %2258 = vmatprep.subr.bf16.mxu0 %v2492_v2  ;;  %v2497_v7 = vld [vmem:[%s3152_s1 + $0x20] sm:$0xff]   ;;  %s264_s30 = scalar_lea.vmem %s3151_s0, %s2448_s16  ;;  %v2499_v9 = vld [vmem:[%s3152_s1 + $0x18] sm:$0xff]   ;;  %v2501_v11 = vld [vmem:[%s3152_s1 + $0x10] sm:$0xff]  }
  0x12   : > { %2290 = vmatprep.subr.bf16.mxu1 %v2493_v3  ;;  %s2707_s12 = scalar_lea.vmem %s264_s30, %s2094_s7  ;;  %v2502_v14 = vld [vmem:[%s3152_s1 + $0x48] sm:$0xff]   ;;  %v2504_v16 = vld [vmem:[%s3152_s1 + $0x40] sm:$0xff]   ;;  %v2510_v18 = vld [vmem:[%s3152_s1 + $0xb8] sm:$0xff]   ;;  %s1892_s7 = sshll.u32 %s2584_s21, 4 }
  0x13   : > { %v2506_v12 = vld [vmem:[%s2707_s12 + $0x8] sm:$0xff]   ;;  %v2507_v13 = vld [vmem:[%s2707_s12] sm:$0xff]   ;;  %v2508_v19 = vld [vmem:[%s2707_s12 + $0x10] sm:$0xff]   ;;  %p2969_p6 = scmp.lt.s32.totalorder %s1892_s7, 31  ;;  %s1893_s21 = sshll.u32 %s3170_s22, 5 }
  0x14   : > { %2259 = vmatpush3.bf16.msra.mxu0 %v2492_v2  ;;  %2272 = vmatprep.mubr.bf16.mxu0 %v2506_v12  ;;  %v2503_v15 = vld [vmem:[%s3152_s1 + $0x8] sm:$0xff]   ;;  %v2505_v17 = vld [vmem:[%s3152_s1] sm:$0xff]   ;;  %v2511_v21 = vld [vmem:[%s3152_s1 + $0xb0] sm:$0xff]  }
  0x15   : > { %2291 = vmatpush3.bf16.msra.mxu1 %v2493_v3  ;;  %2260 = vmatprep.subr.bf16.mxu0 %v2494_v4  ;;  %v2509_v20 = vld [vmem:[%s2707_s12 + $0x8] sm:$0xff]   ;;  %v2512_v22 = vld [vmem:[%s2707_s12 + $0x18] sm:$0xff]   ;;  %v2513_v23 = vld [vmem:[%s2707_s12 + $0x10] sm:$0xff]   ;;  %s3172_s7 = smov (!%p2969_p6, %s1892_s7), 31 }
  0x16   : > { %2292 = vmatprep.subr.bf16.mxu1 %v2495_v5  ;;  %2304 = vmatprep.mubr.bf16.mxu1 %v2507_v13  ;;  %v2516_v24 = vld [vmem:[%s3152_s1 + $0xa8] sm:$0xff]   ;;  %v2514_v25 = vld [vmem:[%s2707_s12 + $0x20] sm:$0xff]   ;;  %v2515_v26 = vld [vmem:[%s2707_s12 + $0x18] sm:$0xff]   ;;  %s271_s22 = sadd.s32 %s1893_s21, %s3172_s7 }
  0x17   : > { %v2517_v27 = vld [vmem:[%s3152_s1 + $0xa0] sm:$0xff]   ;;  %v2518_v28 = vld [vmem:[%s2707_s12 + $0x28] sm:$0xff]   ;;  %v2520_v30 = vld [vmem:[%s2707_s12 + $0x30] sm:$0xff]   ;;  %s1894_s14 = sshll.u32 %s271_s22, 2 }
  0x18   : > { %2261 = vmatpush3.bf16.msra.mxu0 %v2494_v4  ;;  %v2519_v29 = vld [vmem:[%s2707_s12 + $0x20] sm:$0xff]   ;;  %v2522_v31 = vld [vmem:[%s3152_s1 + $0x98] sm:$0xff]   ;;  %v2521_v32 = vld [vmem:[%s2707_s12 + $0x28] sm:$0xff]  }
  0x19   : > { %2293 = vmatpush3.bf16.msra.mxu1 %v2495_v5  ;;  %2262 = vmatprep.subr.bf16.mxu0 %v2496_v6  ;;  %v2523_v33 = vld [vmem:[%s3152_s1 + $0x90] sm:$0xff]   ;;  %v2524_v34 = vld [vmem:[%s2707_s12 + $0x38] sm:$0xff]   ;;  %v2528_v36 = vld [vmem:[%s3152_s1 + $0x88] sm:$0xff]  }
  0x1a   : > { %2294 = vmatprep.subr.bf16.mxu1 %v2497_v7  ;;  %v2525_v35 = vld [vmem:[%s2707_s12 + $0x30] sm:$0xff]   ;;  %v2526_v37 = vld [vmem:[%s2707_s12 + $0x40] sm:$0xff]   ;;  %v2527_v38 = vld [vmem:[%s2707_s12 + $0x38] sm:$0xff]  }
  0x1b   : > { %v2529_v39 = vld [vmem:[%s3152_s1 + $0x80] sm:$0xff]   ;;  %v2530_v40 = vld [vmem:[%s2707_s12 + $0x10] sm:$0xff]   ;;  %v2531_v41 = vld [vmem:[%s2707_s12 + $0x18] sm:$0xff]  }
  0x1c   : > { %2263 = vmatpush3.bf16.msra.mxu0 %v2496_v6  ;;  %v2532_v42 = vld [vmem:[%s2707_s12 + $0x20] sm:$0xff]   ;;  %v2533_v43 = vld [vmem:[%s2707_s12 + $0x28] sm:$0xff]   ;;  %v2534_v44 = vld [vmem:[%s2707_s12 + $0x30] sm:$0xff]  }
  0x1d   : > { %2295 = vmatpush3.bf16.msra.mxu1 %v2497_v7  ;;  %2264 = vmatprep.subr.bf16.mxu0 %v2498_v8  ;;  %v2535_v45 = vld [vmem:[%s2707_s12 + $0x38] sm:$0xff]   ;;  %v2536_v46 = vld [vmem:[%s2707_s12 + $0x40] sm:$0xff]   ;;  %v2537_v47 = vld [vmem:[%s2707_s12 + $0x48] sm:$0xff]   ;;  %s3049_s12 = scalar_lea.vmem %s3157_s6, %s1894_s14 }
  0x1e   : > { %2296 = vmatprep.subr.bf16.mxu1 %v2499_v9  ;;  %v2538_v48 = vld [vmem:[%s3154_s3 + $0x38] sm:$0xff]   ;;  %v2540_v50 = vld [vmem:[%s3154_s3 + $0x30] sm:$0xff]   ;;  %v2542_v52 = vld [vmem:[%s3154_s3 + $0x28] sm:$0xff]  }
  0x1f   : > { %v2539_v49 = vld [vmem:[%s3154_s3 + $0x78] sm:$0xff]   ;;  %v2541_v51 = vld [vmem:[%s3154_s3 + $0x70] sm:$0xff]   ;;  %v2543_v53 = vld [vmem:[%s3154_s3 + $0x68] sm:$0xff]  }
  0x20   : > { %2265 = vmatpush3.bf16.msra.mxu0 %v2498_v8  ;;  %v2544_v54 = vld [vmem:[%s3154_s3 + $0x20] sm:$0xff]   ;;  %v2546_v56 = vld [vmem:[%s3154_s3 + $0x18] sm:$0xff]   ;;  %v2548_v58 = vld [vmem:[%s3154_s3 + $0x10] sm:$0xff]  }
  0x21   : > { %2297 = vmatpush3.bf16.msra.mxu1 %v2499_v9  ;;  %2266 = vmatprep.subr.bf16.mxu0 %v2500_v10  ;;  %v2545_v55 = vld [vmem:[%s3154_s3 + $0x60] sm:$0xff]   ;;  %v2547_v57 = vld [vmem:[%s3154_s3 + $0x58] sm:$0xff]   ;;  %v2549_v59 = vld [vmem:[%s3154_s3 + $0x50] sm:$0xff]  }
  0x22   : > { %2298 = vmatprep.subr.bf16.mxu1 %v2501_v11  ;;  %v2550_v60 = vld [vmem:[%s3154_s3 + $0x8] sm:$0xff]   ;;  %v2552_v62 = vld [vmem:[%s3154_s3] sm:$0xff]   ;;  %v2826_v0 = vld [vmem:[%s3154_s3 + $0xb8] sm:$0xff]  }
  0x23   : > { %v2551_v61 = vld [vmem:[%s3154_s3 + $0x48] sm:$0xff]   ;;  %v2553_v63 = vld [vmem:[%s3154_s3 + $0x40] sm:$0xff]  }
  0x24   : > { %2267 = vmatpush3.bf16.msra.mxu0 %v2500_v10 }
  0x25   : > { %2299 = vmatpush3.bf16.msra.mxu1 %v2501_v11  ;;  %2268 = vmatprep.subr.bf16.mxu0 %v2502_v14 }
  0x26   : > { %2300 = vmatprep.subr.bf16.mxu1 %v2503_v15 }
  0x28   : > { %2269 = vmatpush3.bf16.msra.mxu0 %v2502_v14 }
  0x29   : > { %2301 = vmatpush3.bf16.msra.mxu1 %v2503_v15  ;;  %2270 = vmatprep.subr.bf16.mxu0 %v2504_v16 }
  0x2a   : > { %2302 = vmatprep.subr.bf16.mxu1 %v2505_v17 }
  0x2c   : > { %2271 = vmatpush3.bf16.msra.mxu0 %v2504_v16 }
  0x2d   : > { %2303 = vmatpush3.bf16.msra.mxu1 %v2505_v17  ;;  %2320 = vmatprep.subr.bf16.mxu0 %v2510_v18 }
  0x2e   : > { %2352 = vmatprep.subr.bf16.mxu1 %v2538_v48 }
  0x2f   : > { %2273 = vmatmul.mubr.bf16.vlgmr.msra.gmra.mxu0 %v2508_v19 }
  0x30   : > { %2305 = vmatmul.mubr.bf16.vlgmr.msra.gmra.mxu1 %v2509_v20  ;;  %2321 = vmatpush3.bf16.msra.mxu0 %v2510_v18 }
  0x31   : > { %2322 = vmatprep.subr.bf16.mxu0 %v2511_v21  ;;  %2276 = vmatprep.mubr.bf16.mxu0 %v2512_v22 }
  0x32   : > { %2308 = vmatprep.mubr.bf16.mxu1 %v2513_v23  ;;  %2353 = vmatpush3.bf16.msra.mxu1 %v2538_v48 }
  0x33   : > { %2354 = vmatprep.subr.bf16.mxu1 %v2540_v50 }
  0x34   : > { %2323 = vmatpush3.bf16.msra.mxu0 %v2511_v21 }
  0x35   : > { %2324 = vmatprep.subr.bf16.mxu0 %v2516_v24 }
  0x36   : > { %2355 = vmatpush3.bf16.msra.mxu1 %v2540_v50 }
  0x37   : > { %2277 = vmatmul.mubr.bf16.gmra.mxu0 %v2514_v25  ;;  %2356 = vmatprep.subr.bf16.mxu1 %v2542_v52 }
  0x38   : > { %2309 = vmatmul.mubr.bf16.gmra.mxu1 %v2515_v26  ;;  %2325 = vmatpush3.bf16.msra.mxu0 %v2516_v24 }
  0x39   : > { %2326 = vmatprep.subr.bf16.mxu0 %v2517_v27  ;;  %2280 = vmatprep.mubr.bf16.mxu0 %v2518_v28 }
  0x3a   : > { %2312 = vmatprep.mubr.bf16.mxu1 %v2519_v29  ;;  %2357 = vmatpush3.bf16.msra.mxu1 %v2542_v52 }
  0x3b   : > { %2358 = vmatprep.subr.bf16.mxu1 %v2544_v54 }
  0x3c   : > { %2327 = vmatpush3.bf16.msra.mxu0 %v2517_v27 }
  0x3d   : > { %2328 = vmatprep.subr.bf16.mxu0 %v2522_v31 }
  0x3e   : > { %2359 = vmatpush3.bf16.msra.mxu1 %v2544_v54  ;;  %v2555_v54 = vld [vmem:[%s3154_s3 + $0xb0] sm:$0xff]  }
  0x3f   : > { %2281 = vmatmul.mubr.bf16.gmra.mxu0 %v2520_v30  ;;  %2360 = vmatprep.subr.bf16.mxu1 %v2546_v56 }
  0x40   : > { %2313 = vmatmul.mubr.bf16.gmra.mxu1 %v2521_v32  ;;  %2329 = vmatpush3.bf16.msra.mxu0 %v2522_v31 }
  0x41   : > { %2330 = vmatprep.subr.bf16.mxu0 %v2523_v33  ;;  %2284 = vmatprep.mubr.bf16.mxu0 %v2524_v34 }
  0x42   : > { %2316 = vmatprep.mubr.bf16.mxu1 %v2525_v35  ;;  %2361 = vmatpush3.bf16.msra.mxu1 %v2546_v56 }
  0x43   : > { %2362 = vmatprep.subr.bf16.mxu1 %v2548_v58 }
  0x44   : > { %2331 = vmatpush3.bf16.msra.mxu0 %v2523_v33 }
  0x45   : > { %2332 = vmatprep.subr.bf16.mxu0 %v2528_v36 }
  0x46   : > { %2363 = vmatpush3.bf16.msra.mxu1 %v2548_v58 }
  0x47   : > { %2285 = vmatmul.mubr.bf16.gmra.mxu0 %v2526_v37  ;;  %2364 = vmatprep.subr.bf16.mxu1 %v2550_v60 }
  0x48   : > { %2317 = vmatmul.mubr.bf16.gmra.mxu1 %v2527_v38  ;;  %2333 = vmatpush3.bf16.msra.mxu0 %v2528_v36 }
  0x49   : > { %2334 = vmatprep.subr.bf16.mxu0 %v2529_v39  ;;  %2336 = vmatprep.mubr.bf16.mxu0 %v2530_v40 }
  0x4a   : > { %2365 = vmatpush3.bf16.msra.mxu1 %v2550_v60 }
  0x4b   : > { %2366 = vmatprep.subr.bf16.mxu1 %v2552_v62 }
  0x4c   : > { %2335 = vmatpush3.bf16.msra.mxu0 %v2529_v39  ;;  %v2844_v39 = vld [vmem:[%s3153_s2] ss:$0 sm:$0xff] }
  0x4d   : > { %2384 = vmatprep.subr.bf16.mxu0 %v2539_v49 }
  0x4e   : > { %2367 = vmatpush3.bf16.msra.mxu1 %v2552_v62 }
  0x4f   : > { %2337 = vmatmul.mubr.bf16.vlgmr.msra.gmra.mxu0 %v2531_v41  ;;  %2416 = vmatprep.subr.bf16.mxu1 %v2826_v0 }
  0x50   : > { %2340 = vmatprep.mubr.bf16.mxu0 %v2532_v42  ;;  %2385 = vmatpush3.bf16.msra.mxu0 %v2539_v49 }
  0x51   : > { %2386 = vmatprep.subr.bf16.mxu0 %v2541_v51 }
  0x54   : > { %2387 = vmatpush3.bf16.msra.mxu0 %v2541_v51 }
  0x55   : > { %2388 = vmatprep.subr.bf16.mxu0 %v2543_v53 }
  0x57   : > { %2341 = vmatmul.mubr.bf16.gmra.mxu0 %v2533_v43 }
  0x58   : > { %2344 = vmatprep.mubr.bf16.mxu0 %v2534_v44  ;;  %2389 = vmatpush3.bf16.msra.mxu0 %v2543_v53 }
  0x59   : > { %2390 = vmatprep.subr.bf16.mxu0 %v2545_v55 }
  0x5c   : > { %2391 = vmatpush3.bf16.msra.mxu0 %v2545_v55 }
  0x5d   : > { %2392 = vmatprep.subr.bf16.mxu0 %v2547_v57 }
  0x5f   : > { %2345 = vmatmul.mubr.bf16.gmra.mxu0 %v2535_v45 }
  0x60   : > { %2348 = vmatprep.mubr.bf16.mxu0 %v2536_v46  ;;  %2393 = vmatpush3.bf16.msra.mxu0 %v2547_v57 }
  0x61   : > { %2394 = vmatprep.subr.bf16.mxu0 %v2549_v59 }
  0x64   : > { %2395 = vmatpush3.bf16.msra.mxu0 %v2549_v59 }
  0x65   : > { %2396 = vmatprep.subr.bf16.mxu0 %v2551_v61 }
  0x67   : > { %2349 = vmatmul.mubr.bf16.gmra.mxu0 %v2537_v47 }
  0x68   : > { %2397 = vmatpush3.bf16.msra.mxu0 %v2551_v61 }
  0x69   : > { %2398 = vmatprep.subr.bf16.mxu0 %v2553_v63 }
  0x6c   : > { %2399 = vmatpush3.bf16.msra.mxu0 %v2553_v63 }
  0xef   : > { %v2274_v1 = vpop.f32.mrf.mxu0 }
  0xf0   : > { %v2306_v2 = vpop.f32.mrf.mxu1 }
  0xf1   : > { %v479_v3 = vpop.f32.mrf.mxu0  ;;  %v681_v31 = vadd.f32 %v2306_v2, %v2274_v1  ;;  %v2556_v1 = vld [vmem:[%s3154_s3 + $0xa8] sm:$0xff]  }
  0xf2   : > { %v672_v4 = vpop.f32.mrf.mxu1 }
  0xf3   : > { %v2275_v5 = vpop.f32.mrf.mxu0  ;;  %v673_v29 = vadd.f32 %v672_v4, %v479_v3 }
  0xf4   : > { %v2307_v6 = vpop.f32.mrf.mxu1 }
  0xf5   : > { %v482_v7 = vpop.f32.mrf.mxu0  ;;  %v684_v30 = vadd.f32 %v2307_v6, %v2275_v5 }
  0xf6   : > { %v675_v9 = vpop.f32.mrf.mxu1 }
  0xf7   : > { %v2278_v8 = vpop.f32.mrf.mxu0  ;;  %v676_v33 = vadd.f32 %v675_v9, %v482_v7 }
  0xf8   : > { %v2310_v12 = vpop.f32.mrf.mxu1 }
  0xf9   : > { %v495_v10 = vpop.f32.mrf.mxu0  ;;  %v697_v51 = vadd.f32 %v2310_v12, %v2278_v8  ;;  %v2557_v12 = vld [vmem:[%s3154_s3 + $0xa0] sm:$0xff]  }
  0xfa   : > { %v688_v15 = vpop.f32.mrf.mxu1 }
  0xfb   : > { %v2279_v11 = vpop.f32.mrf.mxu0  ;;  %v689_v48 = vadd.f32 %v688_v15, %v495_v10 }
  0xfc   : > { %v2311_v18 = vpop.f32.mrf.mxu1 }
  0xfd   : > { %v498_v13 = vpop.f32.mrf.mxu0  ;;  %v700_v49 = vadd.f32 %v2311_v18, %v2279_v11 }
  0xfe   : > { %v691_v21 = vpop.f32.mrf.mxu1 }
  0xff   : > { %v2829_v14 = vpop.f32.mrf.mxu0  ;;  %v692_v55 = vadd.f32 %v691_v21, %v498_v13 }
 0x100   : > { %v2314_v24 = vpop.f32.mrf.mxu1 }
 0x101   : > { %v511_v16 = vpop.f32.mrf.mxu0  ;;  %v713_v9 = vadd.f32 %v2314_v24, %v2829_v14 }
 0x102   : > { %v704_v27 = vpop.f32.mrf.mxu1 }
 0x103   : > { %v2283_v17 = vpop.f32.mrf.mxu0  ;;  %v705_v7 = vadd.f32 %v704_v27, %v511_v16 }
 0x104   : > { %v2315_v36 = vpop.f32.mrf.mxu1 }
 0x105   : > { %v2831_v19 = vpop.f32.mrf.mxu0  ;;  %v716_v8 = vadd.f32 %v2315_v36, %v2283_v17 }
 0x106   : > { %v707_v45 = vpop.f32.mrf.mxu1 }
 0x107   : > { %v2833_v20 = vpop.f32.mrf.mxu0  ;;  %v708_v13 = vadd.f32 %v707_v45, %v2831_v19  ;;  %v2558_v19 = vld [vmem:[%s3154_s3 + $0x98] sm:$0xff]  }
 0x108   : > { %v2318_v58 = vpop.f32.mrf.mxu1 }
 0x109   : > { %v2835_v22 = vpop.f32.mrf.mxu0 }
 0x10a   : > { %v720_v4 = vpop.f32.mrf.mxu1 }
 0x10b   : > { %v2837_v23 = vpop.f32.mrf.mxu0 }
 0x10c   : > { %v2319_v16 = vpop.f32.mrf.mxu1 }
 0x10d   : > { %v2839_v25 = vpop.f32.mrf.mxu0 }
 0x10f   : > { %v2338_v26 = vpop.f32.mrf.mxu0 }
 0x110   : > { %v967_v37 = vadd.f32 %v2338_v26, %v681_v31 }
 0x111   : > { %v902_v28 = vpop.f32.mrf.mxu0 }
 0x112   : > { %v965_v34 = vadd.f32 %v902_v28, %v673_v29  ;;  %v993_v46 = vadd.f32 %v2844_v39, %v967_v37  ;;  %v723_v29 = vpop.f32.mrf.mxu1 }
 0x113   : > { %v2339_v32 = vpop.f32.mrf.mxu0 }
 0x114   : > { %v968_v35 = vadd.f32 %v2339_v32, %v684_v30  ;;  %v991_v43 = vadd.f32 %v2844_v39, %v965_v34  ;;  %v721_v32 = vadd.f32 %v720_v4, %v2835_v22 }
 0x115   : > { %v905_v38 = vpop.f32.mrf.mxu0 }
 0x116   : > { %v966_v40 = vadd.f32 %v905_v38, %v676_v33  ;;  %v994_v41 = vadd.f32 %v2844_v39, %v968_v35  ;;  %v732_v33 = vadd.f32 %v2319_v16, %v2837_v23  ;;  %v729_v35 = vadd.f32 %v2318_v58, %v2833_v20  ;;  %v2559_v38 = vld [vmem:[%s3154_s3 + $0x90] sm:$0xff]  }
 0x117   : > { %v2342_v42 = vpop.f32.mrf.mxu0 }
 0x118   : > { %v992_v44 = vadd.f32 %v2844_v39, %v966_v40  ;;  %v2852_v52 = vpack.c.bf16 %v994_v41, %v993_v46  ;;  %v971_v59 = vadd.f32 %v2342_v42, %v697_v51  ;;  %v724_v40 = vadd.f32 %v723_v29, %v2839_v25 }
 0x119   : > { %v918_v47 = vpop.f32.mrf.mxu0 }
 0x11a   : > { %v2850_v50 = vpack.c.bf16 %v992_v44, %v991_v43  ;;  %v969_v56 = vadd.f32 %v918_v47, %v689_v48  ;;  %v997_v5 = vadd.f32 %v2844_v39, %v971_v59  ;;  %v2560_v44 = vld [vmem:[%s3154_s3 + $0x88] sm:$0xff]  }
 0x11b   : > { %v2343_v53 = vpop.f32.mrf.mxu0 }
 0x11c   : > { %v972_v57 = vadd.f32 %v2343_v53, %v700_v49  ;;  %2368 = vmatprep.mubr.bf16.mxu1 %v2850_v50  ;;  %2400 = vmatprep.mubr.bf16.mxu0 %v2850_v50  ;;  %v995_v2 = vadd.f32 %v2844_v39, %v969_v56  ;;  %v2561_v49 = vld [vmem:[%s3154_s3 + $0x80] sm:$0xff]  }
 0x11d   : > { %v921_v60 = vpop.f32.mrf.mxu0  ;;  %2369 = vmatmul.mubr.bf16.vlgmr.msra.gmra.mxu1 %v2852_v52  ;;  %2401 = vmatmul.mubr.bf16.vlgmr.msra.gmra.mxu0 %v2852_v52 }
 0x11e   : > { %v970_v61 = vadd.f32 %v921_v60, %v692_v55  ;;  %2417 = vmatpush3.bf16.msra.mxu1 %v2826_v0  ;;  %v998_v62 = vadd.f32 %v2844_v39, %v972_v57 }
 0x11f   : > { %v2346_v63 = vpop.f32.mrf.mxu0  ;;  %2418 = vmatprep.subr.bf16.mxu1 %v2555_v54 }
 0x120   : > { %v996_v3 = vadd.f32 %v2844_v39, %v970_v61  ;;  %v2872_v11 = vpack.c.bf16 %v998_v62, %v997_v5  ;;  %v975_v17 = vadd.f32 %v2346_v63, %v713_v9  ;;  %v981_v63 = vlaneseq }
 0x121   : > { %v934_v6 = vpop.f32.mrf.mxu0 }
 0x122   : > { %2419 = vmatpush3.bf16.msra.mxu1 %v2555_v54  ;;  %v2869_v0 = vpack.c.bf16 %v996_v3, %v995_v2  ;;  %v973_v15 = vadd.f32 %v934_v6, %v705_v7  ;;  %v1001_v30 = vadd.f32 %v2844_v39, %v975_v17  ;;  %v2922_v4 = vshrl.u32 %v981_v63, 7 }
 0x123   : > { %v2347_v10 = vpop.f32.mrf.mxu0  ;;  %2420 = vmatprep.subr.bf16.mxu1 %v2556_v1  ;;  %v2602_v17 = vmov 0.0  }
 0x124   : > { %v976_v18 = vadd.f32 %v2347_v10, %v716_v8  ;;  %2372 = vmatprep.mubr.bf16.mxu1 %v2869_v0  ;;  %2404 = vmatprep.mubr.bf16.mxu0 %v2869_v0  ;;  %v999_v27 = vadd.f32 %v2844_v39, %v973_v15  ;;  %vm1192_vm0 = vcmp.lt.s32.totalorder %v2922_v4, 1  ;;  %vm1209_vm1 = vcmp.ge.s32.totalorder %v2922_v4, 1 }
 0x125   : > { %v937_v21 = vpop.f32.mrf.mxu0  ;;  %2373 = vmatmul.mubr.bf16.gmra.mxu1 %v2872_v11  ;;  %2405 = vmatmul.mubr.bf16.gmra.mxu0 %v2872_v11  ;;  %v983_v15 = vadd.s32 8, %v2922_v4  ;;  %vm1591_vm3 = vcmp.lt.s32.totalorder %v2922_v4, 7 }
 0x126   : > { %v974_v14 = vadd.f32 %v937_v21, %v708_v13  ;;  %2421 = vmatpush3.bf16.msra.mxu1 %v2556_v1  ;;  %v1002_v24 = vadd.f32 %v2844_v39, %v976_v18  ;;  %v2937_v21 = vsel %vm1209_vm1, 1.0, %v2602_v17 }
 0x127   : > { %v2350_v26 = vpop.f32.mrf.mxu0  ;;  %2422 = vmatprep.subr.bf16.mxu1 %v2557_v12  ;;  %vm1611_vm2 = vcmp.lt.s32.totalorder %v983_v15, 15 }
 0x128   : > { %v1000_v28 = vadd.f32 %v2844_v39, %v974_v14  ;;  %v1012_v37 = vpack.c.bf16 %v1002_v24, %v1001_v30  ;;  %v979_v22 = vadd.f32 %v2350_v26, %v729_v35 }
 0x129   : > { %v950_v31 = vpop.f32.mrf.mxu0 }
 0x12a   : > { %2423 = vmatpush3.bf16.msra.mxu1 %v2557_v12  ;;  %v1011_v34 = vpack.c.bf16 %v1000_v28, %v999_v27  ;;  %v977_v41 = vadd.f32 %v950_v31, %v721_v32  ;;  %v1005_v46 = vadd.f32 %v2844_v39, %v979_v22 }
 0x12b   : > { %v2351_v36 = vpop.f32.mrf.mxu0  ;;  %2424 = vmatprep.subr.bf16.mxu1 %v2558_v19 }
 0x12c   : > { %v980_v42 = vadd.f32 %v2351_v36, %v732_v33  ;;  %2376 = vmatprep.mubr.bf16.mxu1 %v1011_v34  ;;  %2408 = vmatprep.mubr.bf16.mxu0 %v1011_v34  ;;  %v1003_v45 = vadd.f32 %v2844_v39, %v977_v41 }
 0x12d   : > { %v953_v43 = vpop.f32.mrf.mxu0  ;;  %2377 = vmatmul.mubr.bf16.gmra.mxu1 %v1012_v37  ;;  %2409 = vmatmul.mubr.bf16.gmra.mxu0 %v1012_v37 }
 0x12e   : > { %v978_v23 = vadd.f32 %v953_v43, %v724_v40  ;;  %2425 = vmatpush3.bf16.msra.mxu1 %v2558_v19  ;;  %v1006_v20 = vadd.f32 %v2844_v39, %v980_v42 }
 0x12f   : > { %2426 = vmatprep.subr.bf16.mxu1 %v2559_v38 }
 0x130   : > { %v1004_v25 = vadd.f32 %v2844_v39, %v978_v23  ;;  %v1014_v48 = vpack.c.bf16 %v1006_v20, %v1005_v46 }
 0x132   : > { %2427 = vmatpush3.bf16.msra.mxu1 %v2559_v38  ;;  %v1013_v47 = vpack.c.bf16 %v1004_v25, %v1003_v45 }
 0x133   : > { %2428 = vmatprep.subr.bf16.mxu1 %v2560_v44 }
 0x134   : > { %2380 = vmatprep.mubr.bf16.mxu1 %v1013_v47  ;;  %2412 = vmatprep.mubr.bf16.mxu0 %v1013_v47 }
 0x135   : > { %2381 = vmatmul.mubr.bf16.gmra.mxu1 %v1014_v48  ;;  %2413 = vmatmul.mubr.bf16.gmra.mxu0 %v1014_v48 }
 0x136   : > { %2429 = vmatpush3.bf16.msra.mxu1 %v2560_v44  ;;  %2432 = vmatprep.mubr.bf16.mxu1 %v2850_v50  ;;  %v2974_v44 = vsel %vm1611_vm2, 1.0, %v2602_v17 }
 0x137   : > { %2430 = vmatprep.subr.bf16.mxu1 %v2561_v49 }
 0x13a   : > { %2431 = vmatpush3.bf16.msra.mxu1 %v2561_v49 }
 0x13d   : > { %2433 = vmatmul.mubr.bf16.vlgmr.msra.gmra.mxu1 %v2852_v52 }
 0x13e   : > { %2436 = vmatprep.mubr.bf16.mxu1 %v2869_v0 }
 0x145   : > { %2437 = vmatmul.mubr.bf16.gmra.mxu1 %v2872_v11 }
 0x146   : > { %2440 = vmatprep.mubr.bf16.mxu1 %v1011_v34 }
 0x14d   : > { %2441 = vmatmul.mubr.bf16.gmra.mxu1 %v1012_v37 }
 0x14e   : > { %2444 = vmatprep.mubr.bf16.mxu1 %v1013_v47 }
 0x155   : > { %2445 = vmatmul.mubr.bf16.gmra.mxu1 %v1014_v48 }
 0x1dd   : > { %v2370_v39 = vpop.f32.mrf.mxu1  ;;  %v2910_v51 = vpop.f32.mrf.mxu0 }
 0x1de   : > { %v1177_v11 = vrot.slane %v2370_v39, 7 }
 0x1df   : > { %v1113_v53 = vpop.f32.mrf.mxu1  ;;  %v2912_v54 = vpop.f32.mrf.mxu0 }
 0x1e0   : > { %v1176_v12 = vrot.slane %v1113_v53, 7 }
 0x1e1   : > { %v2371_v55 = vpop.f32.mrf.mxu1  ;;  %v2403_v50 = vpop.f32.mrf.mxu0 }
 0x1e2   : > { %v1185_v8 = vrot.slane %v2371_v55, 7 }
 0x1e3   : > { %v1116_v56 = vpop.f32.mrf.mxu1  ;;  %v1337_v58 = vpop.f32.mrf.mxu0 }
 0x1e4   : > { %v1184_v0 = vrot.slane %v1116_v56, 7  ;;  %v1202_v16 = vsel %vm1192_vm0, %v1185_v8, %v1177_v11  ;;  %v1194_v28 = vsel %vm1192_vm0, %v1177_v11, %v1185_v8 }
 0x1e5   : > { %v2374_v57 = vpop.f32.mrf.mxu1  ;;  %v2914_v60 = vpop.f32.mrf.mxu0  ;;  %v1221_v31 = vmul.f32 %v2937_v21, %v1202_v16  ;;  %v1400_v43 = vadd.f32 %v2403_v50, %v1194_v28 }
 0x1e6   : > { %v1201_v14 = vsel %vm1192_vm0, %v1184_v0, %v1176_v12  ;;  %v1179_v24 = vrot.slane %v2374_v57, 7  ;;  %v1193_v33 = vsel %vm1192_vm0, %v1176_v12, %v1184_v0  ;;  %v3013_v0 = vld [vmem:[%s3156_s5] ss:$0 sm:$0xff] }
 0x1e7   : > { %v1129_v52 = vpop.f32.mrf.mxu1  ;;  %v2918_v1 = vpop.f32.mrf.mxu0  ;;  %v1219_v32 = vmul.f32 %v2937_v21, %v1201_v14  ;;  %v1398_v23 = vadd.f32 %v1337_v58, %v1193_v33  ;;  %v1399_v46 = vadd.f32 %v2910_v51, %v1221_v31 }
 0x1e8   : > { %v1178_v34 = vrot.slane %v1129_v52, 7 }
 0x1e9   : > { %v2375_v59 = vpop.f32.mrf.mxu1  ;;  %v2407_v5 = vpop.f32.mrf.mxu0  ;;  %v1397_v48 = vadd.f32 %v2912_v54, %v1219_v32 }
 0x1ea   : > { %v1187_v13 = vrot.slane %v2375_v59, 7 }
 0x1eb   : > { %v1132_v61 = vpop.f32.mrf.mxu1  ;;  %v1353_v9 = vpop.f32.mrf.mxu0 }
 0x1ec   : > { %v1186_v26 = vrot.slane %v1132_v61, 7  ;;  %v1204_v29 = vsel %vm1192_vm0, %v1187_v13, %v1179_v24  ;;  %v1196_v36 = vsel %vm1192_vm0, %v1179_v24, %v1187_v13 }
 0x1ed   : > { %v2916_v62 = vpop.f32.mrf.mxu1  ;;  %v2941_v19 = vpop.f32.mrf.mxu0  ;;  %v1225_v38 = vmul.f32 %v2937_v21, %v1204_v29  ;;  %v2976_v45 = vadd.f32 %v2407_v5, %v1196_v36 }
 0x1ee   : > { %v1181_v37 = vrot.slane %v2916_v62, 7  ;;  %v1203_v40 = vsel %vm1192_vm0, %v1186_v26, %v1178_v34  ;;  %v1195_v41 = vsel %vm1192_vm0, %v1178_v34, %v1186_v26  ;;  %v3000_v62 = vld [vmem:[%s3155_s4] ss:$0 sm:$0xff] }
 0x1ef   : > { %v2920_v2 = vpop.f32.mrf.mxu1  ;;  %v2963_v42 = vpop.f32.mrf.mxu0  ;;  %v1223_v49 = vmul.f32 %v2937_v21, %v1203_v40  ;;  %v2982_v39 = vadd.f32 %v1353_v9, %v1195_v41  ;;  %v1403_v51 = vadd.f32 %v2914_v60, %v1225_v38 }
 0x1f0   : > { %v1180_v50 = vrot.slane %v2920_v2, 7 }
 0x1f1   : > { %v2379_v3 = vpop.f32.mrf.mxu1  ;;  %v2411_v58 = vpop.f32.mrf.mxu0  ;;  %v1401_v12 = vadd.f32 %v2918_v1, %v1223_v49 }
 0x1f2   : > { %v1189_v30 = vrot.slane %v2379_v3, 7 }
 0x1f3   : > { %v2924_v6 = vpop.f32.mrf.mxu1  ;;  %v1369_v13 = vpop.f32.mrf.mxu0 }
 0x1f4   : > { %v1206_v20 = vsel %vm1192_vm0, %v1189_v30, %v1181_v37  ;;  %v1188_v25 = vrot.slane %v2924_v6, 7  ;;  %v1198_v57 = vsel %vm1192_vm0, %v1181_v37, %v1189_v30 }
 0x1f5   : > { %v2926_v7 = vpop.f32.mrf.mxu1  ;;  %v1229_v56 = vmul.f32 %v2937_v21, %v1206_v20  ;;  %v3008_v8 = vadd.f32 %v2411_v58, %v1198_v57 }
 0x1f6   : > { %v1205_v2 = vsel %vm1192_vm0, %v1188_v25, %v1180_v50  ;;  %v1197_v60 = vsel %vm1192_vm0, %v1180_v50, %v1188_v25  ;;  %v1183_v29 = vrot.slane %v2926_v7, 7  ;;  %v3042_v25 = vpop.f32.mrf.mxu0 }
 0x1f7   : > { %v2930_v10 = vpop.f32.mrf.mxu1  ;;  %v1227_v26 = vmul.f32 %v2937_v21, %v1205_v2  ;;  %v3023_v28 = vadd.f32 %v1369_v13, %v1197_v60  ;;  %v3027_v30 = vadd.f32 %v2941_v19, %v1229_v56 }
 0x1f9   : > { %v2933_v18 = vpop.f32.mrf.mxu1  ;;  %v1405_v60 = vadd.f32 %v2963_v42, %v1227_v26 }
 0x1fa   : > { %v1191_v36 = vrot.slane %v2933_v18, 7 }
 0x1fb   : > { %v2943_v27 = vpop.f32.mrf.mxu1 }
 0x1fc   : > { %v1190_v7 = vrot.slane %v2943_v27, 7 }
 0x1fd   : > { %v2434_v35 = vpop.f32.mrf.mxu1 }
 0x1fe   : > { %v1576_v53 = vrot.slane %v2434_v35, 1  ;;  %v1182_v35 = vrot.slane %v2930_v10, 7 }
 0x1ff   : > { %v1512_v22 = vpop.f32.mrf.mxu1 }
 0x200   : > { %v1575_v59 = vrot.slane %v1512_v22, 1 }
 0x201   : > { %v2435_v47 = vpop.f32.mrf.mxu1 }
 0x202   : > { %v1584_v55 = vrot.slane %v2435_v47, 1 }
 0x203   : > { %v1515_v52 = vpop.f32.mrf.mxu1 }
 0x204   : > { %v1593_v54 = vsel %vm1591_vm3, %v1576_v53, %v1584_v55  ;;  %v1601_v61 = vsel %vm1591_vm3, %v1584_v55, %v1576_v53  ;;  %v1583_v63 = vrot.slane %v1515_v52, 1 }
 0x205   : > { %v1621_v3 = vmul.f32 %v2974_v44, %v1601_v61  ;;  %v1636_v5 = vadd.f32 %v1593_v54, %v1399_v46  ;;  %v2438_v6 = vpop.f32.mrf.mxu1 }
 0x206   : > { %v1592_v9 = vsel %vm1591_vm3, %v1575_v59, %v1583_v63  ;;  %v1600_v11 = vsel %vm1591_vm3, %v1583_v63, %v1575_v59  ;;  %v1578_v37 = vrot.slane %v2438_v6, 1  ;;  %v1208_v63 = vsel %vm1192_vm0, %v1191_v36, %v1183_v29 }
 0x207   : > { %v1637_v15 = vadd.f32 %v1621_v3, %v1400_v43  ;;  %v1659_v16 = vmul.f32 %v3000_v62, %v1636_v5  ;;  %v1619_v17 = vmul.f32 %v2974_v44, %v1600_v11  ;;  %v1634_v14 = vadd.f32 %v1592_v9, %v1397_v48  ;;  %v1528_v24 = vpop.f32.mrf.mxu1  ;;  %v3061_v3 = vpop.f32.mrf.mxu0 }
 0x208   : > { %v1577_v43 = vrot.slane %v1528_v24, 1  ;;  %v1200_v5 = vsel %vm1192_vm0, %v1183_v29, %v1191_v36  ;;  %v1233_v42 = vmul.f32 %v2937_v21, %v1208_v63 }
 0x209   : > { %v1660_v1 = vmul.f32 %v3000_v62, %v1637_v15  ;;  %v1682_v31 = vadd.f32 %v3013_v0, %v1659_v16  ;;  %v1635_v32 = vadd.f32 %v1619_v17, %v1398_v23  ;;  %v1657_v33 = vmul.f32 %v3000_v62, %v1634_v14  ;;  %v2439_v34 = vpop.f32.mrf.mxu1 }
 0x20a   : > { %v1586_v38 = vrot.slane %v2439_v34, 1  ;;  %v1207_v17 = vsel %vm1192_vm0, %v1190_v7, %v1182_v35 }
 0x20b   : > { %v1683_v19 = vadd.f32 %v3013_v0, %v1660_v1  ;;  %v1658_v40 = vmul.f32 %v3000_v62, %v1635_v32  ;;  %v1680_v41 = vadd.f32 %v3013_v0, %v1657_v33  ;;  %v1531_v22 = vpop.f32.mrf.mxu1  ;;  %v1698_v46 = vmax.f32 %v1682_v31, 0.0  ;;  %v2415_v32 = vpop.f32.mrf.mxu0 }
 0x20c   : > { %v1595_v23 = vsel %vm1591_vm3, %v1578_v37, %v1586_v38  ;;  %v1603_v20 = vsel %vm1591_vm3, %v1586_v38, %v1578_v37  ;;  %v1585_v18 = vrot.slane %v1531_v22, 1 }
 0x20d   : > { %v1699_v47 = vmax.f32 %v1683_v19, 0.0  ;;  %v1681_v48 = vadd.f32 %v3013_v0, %v1658_v40  ;;  %v1625_v49 = vmul.f32 %v2974_v44, %v1603_v20  ;;  %v2442_v53 = vpop.f32.mrf.mxu1  ;;  %v1696_v55 = vmax.f32 %v1680_v41, 0.0 }
 0x20e   : > { %v1640_v50 = vadd.f32 %v1595_v23, %v1403_v51  ;;  %v1594_v56 = vsel %vm1591_vm3, %v1577_v43, %v1585_v18  ;;  %v1602_v57 = vsel %vm1591_vm3, %v1585_v18, %v1577_v43  ;;  %v1580_v16 = vrot.slane %v2442_v53, 1 }
 0x20f   : > { %v2121_v58 = vpack.c.bf16 %v1699_v47, %v1698_v46  ;;  %v1697_v52 = vmax.f32 %v1681_v48, 0.0  ;;  %v1641_v59 = vadd.f32 %v1625_v49, %v2976_v45  ;;  %v1623_v54 = vmul.f32 %v2974_v44, %v1602_v57  ;;  %v1544_v61 = vpop.f32.mrf.mxu1 }
 0x210   : > { %v1663_v2 = vmul.f32 %v3000_v62, %v1640_v50  ;;  %v1638_v51 = vadd.f32 %v1594_v56, %v1401_v12  ;;  %v1412_v19 = vadd.f32 %v2415_v32, %v1200_v5  ;;  %v1579_v41 = vrot.slane %v1544_v61, 1 }
 0x211   : > { %2153 = vst [vmem:[%s3049_s12 + $0x8] sm:$0xff] %v2121_v58   ;;  %v2116_v6 = vpack.c.bf16 %v1697_v52, %v1696_v55  ;;  %v1664_v45 = vmul.f32 %v3000_v62, %v1641_v59  ;;  %v1639_v9 = vadd.f32 %v1623_v54, %v2982_v39  ;;  %v2443_v11 = vpop.f32.mrf.mxu1  ;;  %v1231_v47 = vmul.f32 %v2937_v21, %v1207_v17 }
 0x212   : > { %v1686_v13 = vadd.f32 %v3013_v0, %v1663_v2  ;;  %v1661_v15 = vmul.f32 %v3000_v62, %v1638_v51  ;;  %v1588_v12 = vrot.slane %v2443_v11, 1  ;;  %v1411_v56 = vadd.f32 %v3042_v25, %v1233_v42  ;;  %v1385_v11 = vpop.f32.mrf.mxu0 }
 0x213   : > { %2117 = vst [vmem:[%s3049_s12] sm:$0xff] %v2116_v6   ;;  %v1687_v14 = vadd.f32 %v3013_v0, %v1664_v45  ;;  %v1662_v39 = vmul.f32 %v3000_v62, %v1639_v9  ;;  %v1547_v24 = vpop.f32.mrf.mxu1  ;;  %v1409_v6 = vadd.f32 %v3061_v3, %v1231_v47 }
 0x214   : > { %v1702_v26 = vmax.f32 %v1686_v13, 0.0  ;;  %v1684_v29 = vadd.f32 %v3013_v0, %v1661_v15  ;;  %v1597_v1 = vsel %vm1591_vm3, %v1580_v16, %v1588_v12  ;;  %v1605_v31 = vsel %vm1591_vm3, %v1588_v12, %v1580_v16 }
 0x215   : > { %v1703_v33 = vmax.f32 %v1687_v14, 0.0  ;;  %v1685_v34 = vadd.f32 %v3013_v0, %v1662_v39  ;;  %v1629_v36 = vmul.f32 %v2974_v44, %v1605_v31  ;;  %v1644_v37 = vadd.f32 %v1597_v1, %v3027_v30  ;;  %v2446_v38 = vpop.f32.mrf.mxu1 }
 0x216   : > { %v1700_v40 = vmax.f32 %v1684_v29, 0.0  ;;  %v1587_v22 = vrot.slane %v1547_v24, 1  ;;  %v1199_v30 = vsel %vm1192_vm0, %v1182_v35, %v1190_v7  ;;  %v1582_v10 = vrot.slane %v2446_v38, 1 }
 0x217   : > { %v2131_v43 = vpack.c.bf16 %v1703_v33, %v1702_v26  ;;  %v1701_v23 = vmax.f32 %v1685_v34, 0.0  ;;  %v1645_v20 = vadd.f32 %v1629_v36, %v3008_v8  ;;  %v1667_v18 = vmul.f32 %v3000_v62, %v1644_v37  ;;  %v1560_v46 = vpop.f32.mrf.mxu1 }
 0x218   : > { %v1596_v48 = vsel %vm1591_vm3, %v1579_v41, %v1587_v22  ;;  %v1604_v49 = vsel %vm1591_vm3, %v1587_v22, %v1579_v41  ;;  %v1581_v52 = vrot.slane %v1560_v46, 1  ;;  %v1410_v42 = vadd.f32 %v1385_v11, %v1199_v30 }
 0x219   : > { %2155 = vst [vmem:[%s3049_s12 + $0x18] sm:$0xff] %v2131_v43   ;;  %v2126_v8 = vpack.c.bf16 %v1701_v23, %v1700_v40  ;;  %v1668_v53 = vmul.f32 %v3000_v62, %v1645_v20  ;;  %v1690_v55 = vadd.f32 %v3013_v0, %v1667_v18  ;;  %v1627_v21 = vmul.f32 %v2974_v44, %v1604_v49  ;;  %v2447_v27 = vpop.f32.mrf.mxu1 }
 0x21a   : > { %v1642_v50 = vadd.f32 %v1596_v48, %v1405_v60  ;;  %v1590_v35 = vrot.slane %v2447_v27, 1 }
 0x21b   : > { %2154 = vst [vmem:[%s3049_s12 + $0x10] sm:$0xff] %v2126_v8   ;;  %v1691_v7 = vadd.f32 %v3013_v0, %v1668_v53  ;;  %v1706_v57 = vmax.f32 %v1690_v55, 0.0  ;;  %v1643_v58 = vadd.f32 %v1627_v21, %v3023_v28  ;;  %v1563_v59 = vpop.f32.mrf.mxu1 }
 0x21c   : > { %v1665_v54 = vmul.f32 %v3000_v62, %v1642_v50  ;;  %v1599_v61 = vsel %vm1591_vm3, %v1582_v10, %v1590_v35  ;;  %v1607_v63 = vsel %vm1591_vm3, %v1590_v35, %v1582_v10  ;;  %v1589_v2 = vrot.slane %v1563_v59, 1 }
 0x21d   : > { %v1707_v51 = vmax.f32 %v1691_v7, 0.0  ;;  %v1666_v25 = vmul.f32 %v3000_v62, %v1643_v58  ;;  %v1633_v60 = vmul.f32 %v2974_v44, %v1607_v63  ;;  %v1648_v5 = vadd.f32 %v1599_v61, %v1411_v56 }
 0x21e   : > { %v1688_v28 = vadd.f32 %v3013_v0, %v1665_v54  ;;  %v1598_v45 = vsel %vm1591_vm3, %v1581_v52, %v1589_v2  ;;  %v1606_v9 = vsel %vm1591_vm3, %v1589_v2, %v1581_v52 }
 0x21f   : > { %v2141_v13 = vpack.c.bf16 %v1707_v51, %v1706_v57  ;;  %v1689_v15 = vadd.f32 %v3013_v0, %v1666_v25  ;;  %v1649_v16 = vadd.f32 %v1633_v60, %v1412_v19  ;;  %v1671_v12 = vmul.f32 %v3000_v62, %v1648_v5 }
 0x220   : > { %v1631_v17 = vmul.f32 %v2974_v44, %v1606_v9  ;;  %v1646_v14 = vadd.f32 %v1598_v45, %v1409_v6  ;;  %v1704_v3 = vmax.f32 %v1688_v28, 0.0 }
 0x221   : > { %2157 = vst [vmem:[%s3049_s12 + $0x28] sm:$0xff] %v2141_v13   ;;  %v1705_v39 = vmax.f32 %v1689_v15, 0.0  ;;  %v1672_v24 = vmul.f32 %v3000_v62, %v1649_v16  ;;  %v1694_v4 = vadd.f32 %v3013_v0, %v1671_v12 }
 0x222   : > { %v1647_v26 = vadd.f32 %v1631_v17, %v1410_v42  ;;  %v1669_v29 = vmul.f32 %v3000_v62, %v1646_v14 }
 0x223   : > { %v2136_v1 = vpack.c.bf16 %v1705_v39, %v1704_v3  ;;  %v1695_v31 = vadd.f32 %v3013_v0, %v1672_v24  ;;  %v1710_v33 = vmax.f32 %v1694_v4, 0.0 }
 0x224   : > { %v1670_v32 = vmul.f32 %v3000_v62, %v1647_v26  ;;  %v1692_v44 = vadd.f32 %v3013_v0, %v1669_v29 }
 0x225   : > { %2156 = vst [vmem:[%s3049_s12 + $0x20] sm:$0xff] %v2136_v1   ;;  %v1711_v34 = vmax.f32 %v1695_v31, 0.0 }
 0x226   : > { %v1693_v36 = vadd.f32 %v3013_v0, %v1670_v32  ;;  %v1708_v38 = vmax.f32 %v1692_v44, 0.0 }
 0x227   : > { %v2151_v37 = vpack.c.bf16 %v1711_v34, %v1710_v33 }
 0x228   : > { %v1709_v19 = vmax.f32 %v1693_v36, 0.0 }
 0x229   : > { %2159 = vst [vmem:[%s3049_s12 + $0x38] sm:$0xff] %v2151_v37  }
 0x22a   : > { %v2146_v40 = vpack.c.bf16 %v1709_v19, %v1708_v38 }
 0x22c   : > { %2158 = vst [vmem:[%s3049_s12 + $0x30] sm:$0xff] %v2146_v40  }
 0x22d PF: > { %s16_s25 = sadd.s32 1, %s2600_s25   ;;  %s3159_s21 = smov %s2592_s23 }
 0x22e   : > { %p13_p7 = scmp.ge.s32.totalorder %s16_s25, 6   ;;  %s3160_s22 = smov %s2596_s24 }
 0x22f   : > { %s3161_s23 = smov %s3164_s26  ;;  %s3162_s24 = smov %s3168_s27 }
 0x230   :  { %15 = sbr.rel (!%p13_p7) target bundleno = 3 (0x3), region = 81 }

</bundles_post_ra>
